<compile_context>
chip_gen: v6e
topology: v6e:2x2x1
jax: 0.10.0
libtpu: 0.0.40
codegen_flags: <defaults>
</compile_context>

<pallas_src>
import math

import jax
import jax.numpy as jnp
from jax.experimental import pallas as pl
from jax.experimental.pallas import tpu as pltpu


def _mlp_kernel(x_ref, w1_ref, b1_ref, w2_ref, b2_ref, w3_ref, b3_ref, o_ref):
    """Fused forward pass for one batch tile.

    x_ref : (TB, state_dim)   bf16 VMEM
    w1_ref: (state_dim, H)    bf16 VMEM
    b1_ref: (1, H)            f32  VMEM
    w2_ref: (H, H)            bf16 VMEM
    b2_ref: (1, H)            f32  VMEM
    w3_ref: (H, OUT_PAD)      bf16 VMEM
    b3_ref: (1, OUT_PAD)      f32  VMEM
    o_ref : (TB, OUT_PAD)     f32  VMEM
    """
    x = x_ref[...]  # bf16

    # bf16 MXU matmuls with f32 accumulation; elementwise math in f32.
    h1 = jnp.dot(x, w1_ref[...], preferred_element_type=jnp.float32) + b1_ref[...]
    h1 = jnp.maximum(h1, 0.0)  # ReLU (f32)

    h2 = jnp.dot(h1.astype(jnp.bfloat16), w2_ref[...],
                 preferred_element_type=jnp.float32) + b2_ref[...]
    h2 = jnp.maximum(h2, 0.0)  # ReLU (f32)

    h3 = jnp.dot(h2.astype(jnp.bfloat16), w3_ref[...],
                 preferred_element_type=jnp.float32) + b3_ref[...]
    o_ref[...] = jnp.tanh(h3).astype(o_ref.dtype)


def _round_up(x, m):
    return ((x + m - 1) // m) * m


def baseline_net_forward(x, params, *, batch_tile=None, max_batch_tile=512):
    """Runs the fused MLP kernel.

    x: (B, state_dim) float32.  Returns (B, output_dim) float32.
    """
    w1, b1, w2, b2, w3, b3 = params
    B, state_dim = x.shape
    H = w1.shape[1]
    out_dim = w3.shape[1]

    # ---- batch tile selection (multiple of 8; capped to bound h1/h2 VMEM use
    # and to give large batches a multi-step pipelined / megacore-sharded grid).
    if batch_tile is None:
        b_pad8 = _round_up(B, 8)
        batch_tile = b_pad8 if b_pad8 <= max_batch_tile else max_batch_tile
    assert batch_tile % 8 == 0, "batch_tile must be a multiple of 8 (f32 sublane)"
    B_pad = _round_up(B, batch_tile)
    grid = (B_pad // batch_tile,)

    # ---- lane-dense output: pad out_dim up to a multiple of 128.
    out_pad = _round_up(out_dim, 128)

    # ---- host-side padding / casting (halves x & weight DMA bytes, feeds MXU bf16).
    x_p = x if B_pad == B else jnp.pad(x, ((0, B_pad - B), (0, 0)))
    x_bf = x_p.astype(jnp.bfloat16)
    w1_bf = w1.astype(jnp.bfloat16)
    w2_bf = w2.astype(jnp.bfloat16)
    if out_pad != out_dim:
        w3_p = jnp.pad(w3, ((0, 0), (0, out_pad - out_dim)))
        b3_p = jnp.pad(b3, ((0, out_pad - out_dim),))
    else:
        w3_p, b3_p = w3, b3
    w3_bf = w3_p.astype(jnp.bfloat16)

    # Biases as (1, N) f32 tiles (broadcast over rows inside the kernel).
    b1_2d = b1.reshape(1, H).astype(jnp.float32)
    b2_2d = b2.reshape(1, H).astype(jnp.float32)
    b3_2d = b3_p.reshape(1, out_pad).astype(jnp.float32)

    # Weights/biases: full-array blocks, constant across the batch grid.
    full = lambda shape: pl.BlockSpec(shape, lambda i: (0,) * len(shape))

    out = pl.pallas_call(
        _mlp_kernel,
        out_shape=jax.ShapeDtypeStruct((B_pad, out_pad), jnp.float32),
        grid_spec=pltpu.PrefetchScalarGridSpec(
            num_scalar_prefetch=0,
            grid=grid,
            in_specs=[
                pl.BlockSpec((batch_tile, state_dim), lambda i: (i, 0)),
                full((state_dim, H)),
                full((1, H)),
                full((H, H)),
                full((1, H)),
                full((H, out_pad)),
                full((1, out_pad)),
            ],
            out_specs=pl.BlockSpec((batch_tile, out_pad), lambda i: (i, 0)),
        ),
        compiler_params=pltpu.CompilerParams(
            dimension_semantics=("parallel",),
        ),
    )(x_bf, w1_bf, b1_2d, w2_bf, b2_2d, w3_bf, b3_2d)

    return out[:B, :out_dim]


def init_params(key, state_dim, hidden_dim, output_dim):
    """PyTorch-style init: U(-1/sqrt(fan_in), 1/sqrt(fan_in)).

    Weights stored as (in_features, out_features) = PyTorch weight^T.
    """
    ks = jax.random.split(key, 6)

    def linear(kw, kb, fan_in, fan_out):
        bound = 1.0 / math.sqrt(fan_in)
        w = jax.random.uniform(kw, (fan_in, fan_out), jnp.float32, -bound, bound)
        b = jax.random.uniform(kb, (fan_out,), jnp.float32, -bound, bound)
        return w, b

    w1, b1 = linear(ks[0], ks[1], state_dim, hidden_dim)
    w2, b2 = linear(ks[2], ks[3], hidden_dim, hidden_dim)
    w3, b3 = linear(ks[4], ks[5], hidden_dim, output_dim)
    return (w1, b1, w2, b2, w3, b3)


def reference_forward(x, params):
    """Pure-JAX f32 reference of BaselineNet.forward for verification."""
    w1, b1, w2, b2, w3, b3 = params
    h = jnp.maximum(x @ w1 + b1, 0.0)
    h = jnp.maximum(h @ w2 + b2, 0.0)
    return jnp.tanh(h @ w3 + b3)


if __name__ == "__main__":
    # Small shapes consistent with the module (hidden_dim=256 is fixed in __init__).
    batch = 8
    state_dim = 32
    hidden_dim = 256
    output_dim = 8

    key = jax.random.PRNGKey(0)
    kx, kp, kx2 = jax.random.split(key, 3)
    x = jax.random.normal(kx, (batch, state_dim), dtype=jnp.float32)
    params = init_params(kp, state_dim, hidden_dim, output_dim)

    fwd = jax.jit(baseline_net_forward, static_argnames=("batch_tile", "max_batch_tile"))

    # Demo-size run (single grid step; at this size the kernel is overhead-bound —
    # the tiling/bf16 levers pay off only for large-batch rollouts/inference).
    out = jax.block_until_ready(fwd(x, params))
    ref = reference_forward(x, params)
    assert out.shape == (batch, output_dim), out.shape
    # bf16 matmul inputs -> looser tolerance than the f32 kernel.
    assert jnp.allclose(out, ref, atol=3e-2, rtol=3e-2), "mismatch vs reference (B=8)"

    # Second check: non-multiple-of-8 batch with a forced small tile so the grid
    # has >1 step (exercises row padding, multi-step pipelining, output slicing).
    x2 = jax.random.normal(kx2, (300, state_dim), dtype=jnp.float32)
    out2 = jax.block_until_ready(fwd(x2, params, max_batch_tile=128))
    ref2 = reference_forward(x2, params)
    assert out2.shape == (300, output_dim), out2.shape
    assert jnp.allclose(out2, ref2, atol=3e-2, rtol=3e-2), "mismatch vs reference (B=300)"

    print("KERNEL_OK")
</pallas_src>

<mosaic_0001>
module attributes {stable_mosaic.version = 11 : i64} {
  func.func @_mlp_kernel(%arg0: i32, %arg1: memref<8x32xbf16, #tpu.memory_space<vmem>>, %arg2: memref<32x256xbf16, #tpu.memory_space<vmem>>, %arg3: memref<1x256xf32, #tpu.memory_space<vmem>>, %arg4: memref<256x256xbf16, #tpu.memory_space<vmem>>, %arg5: memref<1x256xf32, #tpu.memory_space<vmem>>, %arg6: memref<256x128xbf16, #tpu.memory_space<vmem>>, %arg7: memref<1x128xf32, #tpu.memory_space<vmem>>, %arg8: memref<8x128xf32, #tpu.memory_space<vmem>>) attributes {dimension_semantics = [#tpu.dimension_semantics<parallel>], iteration_bounds = array<i64: 1>, scalar_prefetch = 0 : i64, scratch_operands = 0 : i64, tpu.core_type = #tpu.core_type<tc>, window_params = [{transform_indices = @transform_0, window_bounds = array<i64: 8, 32>}, {pipeline_mode = #tpu.pipeline_mode<synchronous>, transform_indices = @transform_1, window_bounds = array<i64: 32, 256>}, {pipeline_mode = #tpu.pipeline_mode<synchronous>, transform_indices = @transform_2, window_bounds = array<i64: 1, 256>}, {pipeline_mode = #tpu.pipeline_mode<synchronous>, transform_indices = @transform_3, window_bounds = array<i64: 256, 256>}, {pipeline_mode = #tpu.pipeline_mode<synchronous>, transform_indices = @transform_4, window_bounds = array<i64: 1, 256>}, {pipeline_mode = #tpu.pipeline_mode<synchronous>, transform_indices = @transform_5, window_bounds = array<i64: 256, 128>}, {pipeline_mode = #tpu.pipeline_mode<synchronous>, transform_indices = @transform_6, window_bounds = array<i64: 1, 128>}, {transform_indices = @transform_7, window_bounds = array<i64: 8, 128>}]} {
    %c0 = arith.constant 0 : index
    %c0_0 = arith.constant 0 : index
    %0 = vector.load %arg1[%c0, %c0_0] : memref<8x32xbf16, #tpu.memory_space<vmem>>, vector<8x32xbf16>
    %c0_1 = arith.constant 0 : index
    %c0_2 = arith.constant 0 : index
    %1 = vector.load %arg2[%c0_1, %c0_2] : memref<32x256xbf16, #tpu.memory_space<vmem>>, vector<32x256xbf16>
    %cst = arith.constant dense<0.000000e+00> : vector<8x256xf32>
    %2 = tpu.matmul %0, %1, %cst {dimension_numbers = #tpu.dot_dimension_numbers<[1], [0], [0], [1], [0, 0, 1, 1], [], []>} : vector<8x32xbf16>, vector<32x256xbf16>, vector<8x256xf32> -> vector<8x256xf32>
    %c0_3 = arith.constant 0 : index
    %c0_4 = arith.constant 0 : index
    %3 = vector.load %arg3[%c0_3, %c0_4] : memref<1x256xf32, #tpu.memory_space<vmem>>, vector<1x256xf32>
    %4 = vector.broadcast %3 : vector<1x256xf32> to vector<8x256xf32>
    %5 = arith.addf %2, %4 : vector<8x256xf32>
    %cst_5 = arith.constant 0.000000e+00 : f32
    %6 = vector.broadcast %cst_5 : f32 to vector<8x256xf32>
    %7 = arith.maximumf %5, %6 : vector<8x256xf32>
    %8 = arith.truncf %7 : vector<8x256xf32> to vector<8x256xbf16>
    %c0_6 = arith.constant 0 : index
    %c0_7 = arith.constant 0 : index
    %9 = vector.load %arg4[%c0_6, %c0_7] : memref<256x256xbf16, #tpu.memory_space<vmem>>, vector<256x256xbf16>
    %cst_8 = arith.constant dense<0.000000e+00> : vector<8x256xf32>
    %10 = tpu.matmul %8, %9, %cst_8 {dimension_numbers = #tpu.dot_dimension_numbers<[1], [0], [0], [1], [0, 0, 1, 1], [], []>} : vector<8x256xbf16>, vector<256x256xbf16>, vector<8x256xf32> -> vector<8x256xf32>
    %c0_9 = arith.constant 0 : index
    %c0_10 = arith.constant 0 : index
    %11 = vector.load %arg5[%c0_9, %c0_10] : memref<1x256xf32, #tpu.memory_space<vmem>>, vector<1x256xf32>
    %12 = vector.broadcast %11 : vector<1x256xf32> to vector<8x256xf32>
    %13 = arith.addf %10, %12 : vector<8x256xf32>
    %cst_11 = arith.constant 0.000000e+00 : f32
    %14 = vector.broadcast %cst_11 : f32 to vector<8x256xf32>
    %15 = arith.maximumf %13, %14 : vector<8x256xf32>
    %16 = arith.truncf %15 : vector<8x256xf32> to vector<8x256xbf16>
    %c0_12 = arith.constant 0 : index
    %c0_13 = arith.constant 0 : index
    %17 = vector.load %arg6[%c0_12, %c0_13] : memref<256x128xbf16, #tpu.memory_space<vmem>>, vector<256x128xbf16>
    %cst_14 = arith.constant dense<0.000000e+00> : vector<8x128xf32>
    %18 = tpu.matmul %16, %17, %cst_14 {dimension_numbers = #tpu.dot_dimension_numbers<[1], [0], [0], [1], [0, 0, 1, 1], [], []>} : vector<8x256xbf16>, vector<256x128xbf16>, vector<8x128xf32> -> vector<8x128xf32>
    %c0_15 = arith.constant 0 : index
    %c0_16 = arith.constant 0 : index
    %19 = vector.load %arg7[%c0_15, %c0_16] : memref<1x128xf32, #tpu.memory_space<vmem>>, vector<1x128xf32>
    %20 = vector.broadcast %19 : vector<1x128xf32> to vector<8x128xf32>
    %21 = arith.addf %18, %20 : vector<8x128xf32>
    %22 = math.tanh %21 : vector<8x128xf32>
    %c0_17 = arith.constant 0 : index
    %c0_18 = arith.constant 0 : index
    %23 = vector.load %arg8[%c0_17, %c0_18] : memref<8x128xf32, #tpu.memory_space<vmem>>, vector<8x128xf32>
    tpu.vector_store %arg8[%c0_17, %c0_18], %22 {strides = array<i32>} : memref<8x128xf32, #tpu.memory_space<vmem>>, vector<8x128xf32>,
    return
  }
  func.func @transform_0(%arg0: i32) -> (i32, i32) {
    %c0_i32 = arith.constant 0 : i32
    %c0_i32_0 = arith.constant 0 : i32
    return %arg0, %c0_i32 : i32, i32
  }
  func.func @transform_1(%arg0: i32) -> (i32, i32) {
    %c0_i32 = arith.constant 0 : i32
    %c0_i32_0 = arith.constant 0 : i32
    %c0_i32_1 = arith.constant 0 : i32
    return %c0_i32, %c0_i32_0 : i32, i32
  }
  func.func @transform_2(%arg0: i32) -> (i32, i32) {
    %c0_i32 = arith.constant 0 : i32
    %c0_i32_0 = arith.constant 0 : i32
    %c0_i32_1 = arith.constant 0 : i32
    return %c0_i32, %c0_i32_0 : i32, i32
  }
  func.func @transform_3(%arg0: i32) -> (i32, i32) {
    %c0_i32 = arith.constant 0 : i32
    %c0_i32_0 = arith.constant 0 : i32
    %c0_i32_1 = arith.constant 0 : i32
    return %c0_i32, %c0_i32_0 : i32, i32
  }
  func.func @transform_4(%arg0: i32) -> (i32, i32) {
    %c0_i32 = arith.constant 0 : i32
    %c0_i32_0 = arith.constant 0 : i32
    %c0_i32_1 = arith.constant 0 : i32
    return %c0_i32, %c0_i32_0 : i32, i32
  }
  func.func @transform_5(%arg0: i32) -> (i32, i32) {
    %c0_i32 = arith.constant 0 : i32
    %c0_i32_0 = arith.constant 0 : i32
    %c0_i32_1 = arith.constant 0 : i32
    return %c0_i32, %c0_i32_0 : i32, i32
  }
  func.func @transform_6(%arg0: i32) -> (i32, i32) {
    %c0_i32 = arith.constant 0 : i32
    %c0_i32_0 = arith.constant 0 : i32
    %c0_i32_1 = arith.constant 0 : i32
    return %c0_i32, %c0_i32_0 : i32, i32
  }
  func.func @transform_7(%arg0: i32) -> (i32, i32) {
    %c0_i32 = arith.constant 0 : i32
    %c0_i32_0 = arith.constant 0 : i32
    return %arg0, %c0_i32 : i32, i32
  }
}

</mosaic_0001>

<bundles_post_ra>
// kernel: baseline_net_forward.1
= control target key start
LH: loop header
LB: loop body
LE: loop exit
PB: predicated region body
PF: predicated region fallthrough
CT: control target
= control target key end

     0   :  { %v726_v2 = vmov 0   ;;  %vm65_vm0 = vcmask 261120   ;;  %s939_s0 = inlined_call_operand.vmem [shape: bf16[8,32], index: 0, kind: input, shape index: {}]   ;;  %s940_s1 = inlined_call_operand.vmem [shape: bf16[32,256], index: 1, kind: input, shape index: {}]   ;;  %s941_s2 = inlined_call_operand.vmem [shape: f32[1,256], index: 2, kind: input, shape index: {}]   ;;  %s942_s3 = inlined_call_operand.vmem [shape: bf16[256,256], index: 3, kind: input, shape index: {}]   ;;  %s943_s4 = inlined_call_operand.vmem [shape: f32[1,256], index: 4, kind: input, shape index: {}]   ;;  %s944_s5 = inlined_call_operand.vmem [shape: bf16[256,128], index: 5, kind: input, shape index: {}]   ;;  %s945_s6 = inlined_call_operand.vmem [shape: f32[1,128], index: 6, kind: input, shape index: {}]   ;;  %s946_s7 = inlined_call_operand.hbm [shape: f32[8,128], index: 7, kind: output, shape index: {}]  }
   0x1   :  { %v632_v0 = vld [vmem:[%s940_s1 + $0x14] ss:$8 sps:$4 sm:$0xff]   ;;  %v634_v1 = vld [vmem:[%s940_s1 + $0x10] ss:$8 sps:$4 sm:$0xff]   ;;  %101 = vmatprep.mubr.bf16.mxu0 %v726_v2  ;;  %v635_v3 = vld [vmem:[%s940_s1 + $0x4] ss:$8 sps:$4 sm:$0xff]  }
   0x2   :  { %81 = vmatprep.subr.bf16.mxu0 %v632_v0  ;;  %v637_v4 = vld [vmem:[%s940_s1] ss:$8 sps:$4 sm:$0xff]   ;;  %v638_v5 = vld [vmem:[%s942_s3 + $0x74] ss:$8 sps:$4 sm:$0xff]   ;;  %v640_v6 = vld [vmem:[%s942_s3 + $0x70] ss:$8 sps:$4 sm:$0xff]  }
   0x3   :  { %82 = vmatpush1.bf16.msra.mxu0 %v634_v1  ;;  %318 = vmatprep.subr.bf16.mxu1 %v638_v5  ;;  %v641_v7 = vld [vmem:[%s942_s3 + $0x64] ss:$8 sps:$4 sm:$0xff]   ;;  %v28_v8 = vld [vmem:[%s939_s0] sm:$0xf]  ;;  %v644_v10 = vld [vmem:[%s942_s3 + $0x54] ss:$8 sps:$4 sm:$0xff]  }
   0x4   :  { %83 = vmatprep.subr.bf16.mxu0 %v635_v3  ;;  %319 = vmatpush1.bf16.msra.mxu1 %v640_v6  ;;  %v643_v9 = vld [vmem:[%s942_s3 + $0x60] ss:$8 sps:$4 sm:$0xff]   ;;  %v646_v11 = vld [vmem:[%s942_s3 + $0x50] ss:$8 sps:$4 sm:$0xff]   ;;  %v647_v12 = vld [vmem:[%s942_s3 + $0x44] ss:$8 sps:$4 sm:$0xff]  }
   0x5   :  { %320 = vmatprep.subr.bf16.mxu1 %v641_v7  ;;  %v649_v13 = vld [vmem:[%s942_s3 + $0x40] ss:$8 sps:$4 sm:$0xff]   ;;  %v650_v14 = vld [vmem:[%s942_s3 + $0x34] ss:$8 sps:$4 sm:$0xff]   ;;  %v652_v15 = vld [vmem:[%s942_s3 + $0x30] ss:$8 sps:$4 sm:$0xff]  }
   0x6   :  { %v653_v16 = vld [vmem:[%s942_s3 + $0x24] ss:$8 sps:$4 sm:$0xff]   ;;  %v655_v17 = vld [vmem:[%s942_s3 + $0x20] ss:$8 sps:$4 sm:$0xff]   ;;  %v656_v18 = vld [vmem:[%s942_s3 + $0x14] ss:$8 sps:$4 sm:$0xff]  }
   0x7   :  { %84 = vmatpush1.bf16.msra.mxu0 %v637_v4  ;;  %v658_v19 = vld [vmem:[%s942_s3 + $0x10] ss:$8 sps:$4 sm:$0xff]   ;;  %v659_v20 = vld [vmem:[%s942_s3 + $0x4] ss:$8 sps:$4 sm:$0xff]   ;;  %v661_v21 = vld [vmem:[%s942_s3] ss:$8 sps:$4 sm:$0xff]  }
   0x8   :  { %321 = vmatpush1.bf16.msra.mxu1 %v643_v9  ;;  %v662_v22 = vld [vmem:[%s942_s3 + $0xf4] ss:$8 sps:$4 sm:$0xff]   ;;  %v664_v23 = vld [vmem:[%s942_s3 + $0xf0] ss:$8 sps:$4 sm:$0xff]  }
   0x9   :  { %322 = vmatprep.subr.bf16.mxu1 %v644_v10 }
   0xa   :  { %558 = vmatmul.mubr.msk.bf16.vlgmr.msra.gmra.mxu0 %vm65_vm0, %v28_v8 }
   0xc   :  { %323 = vmatpush1.bf16.msra.mxu1 %v646_v11 }
   0xd   :  { %324 = vmatprep.subr.bf16.mxu1 %v647_v12 }
  0x10   :  { %325 = vmatpush1.bf16.msra.mxu1 %v649_v13 }
  0x11   :  { %326 = vmatprep.subr.bf16.mxu1 %v650_v14 }
  0x14   :  { %327 = vmatpush1.bf16.msra.mxu1 %v652_v15 }
  0x15   :  { %328 = vmatprep.subr.bf16.mxu1 %v653_v16 }
  0x18   :  { %329 = vmatpush1.bf16.msra.mxu1 %v655_v17 }
  0x19   :  { %330 = vmatprep.subr.bf16.mxu1 %v656_v18 }
  0x1c   :  { %331 = vmatpush1.bf16.msra.mxu1 %v658_v19 }
  0x1d   :  { %332 = vmatprep.subr.bf16.mxu1 %v659_v20 }
  0x20   :  { %333 = vmatpush1.bf16.msra.mxu1 %v661_v21 }
  0x21   :  { %12 = vsyncpa [#allocation3], 0  ;;  %334 = vmatprep.subr.bf16.mxu1 %v662_v22  ;;  %v665_v24 = vld [vmem:[%s942_s3 + $0xe4] ss:$8 sps:$4 sm:$0xff]   ;;  %v667_v25 = vld [vmem:[%s942_s3 + $0xe0] ss:$8 sps:$4 sm:$0xff]   ;;  %v35_v50 = vlaneseq }
  0x22   :  { %v668_v26 = vld [vmem:[%s942_s3 + $0xd4] ss:$8 sps:$4 sm:$0xff]   ;;  %v670_v27 = vld [vmem:[%s942_s3 + $0xd0] ss:$8 sps:$4 sm:$0xff]   ;;  %v671_v28 = vld [vmem:[%s942_s3 + $0xc4] ss:$8 sps:$4 sm:$0xff]  }
  0x23   :  { %v673_v29 = vld [vmem:[%s942_s3 + $0xc0] ss:$8 sps:$4 sm:$0xff]   ;;  %v674_v30 = vld [vmem:[%s942_s3 + $0xb4] ss:$8 sps:$4 sm:$0xff]   ;;  %v676_v31 = vld [vmem:[%s942_s3 + $0xb0] ss:$8 sps:$4 sm:$0xff]  }
  0x24   :  { %335 = vmatpush2.bf16.msra.mxu1 %v664_v23  ;;  %v677_v32 = vld [vmem:[%s942_s3 + $0xa4] ss:$8 sps:$4 sm:$0xff]   ;;  %v679_v33 = vld [vmem:[%s942_s3 + $0xa0] ss:$8 sps:$4 sm:$0xff]   ;;  %v680_v34 = vld [vmem:[%s942_s3 + $0x94] ss:$8 sps:$4 sm:$0xff]  }
  0x25   :  { %336 = vmatprep.subr.bf16.mxu1 %v665_v24  ;;  %v682_v35 = vld [vmem:[%s942_s3 + $0x90] ss:$8 sps:$4 sm:$0xff]   ;;  %v683_v36 = vld [vmem:[%s942_s3 + $0x84] ss:$8 sps:$4 sm:$0xff]   ;;  %v685_v37 = vld [vmem:[%s942_s3 + $0x80] ss:$8 sps:$4 sm:$0xff]  }
  0x26   :  { %v686_v38 = vld [vmem:[%s944_s5 + $0x78] sm:$0xff]   ;;  %v688_v40 = vld [vmem:[%s944_s5 + $0x70] sm:$0xff]   ;;  %v690_v42 = vld [vmem:[%s944_s5 + $0x68] sm:$0xff]   ;;  %v36_v51 = vshrl.u32 %v35_v50, 7 }
  0x27   :  { %v687_v39 = vld [vmem:[%s944_s5 + $0x38] sm:$0xff]   ;;  %608 = vmatprep.subr.bf16.mxu0 %v686_v38  ;;  %v689_v41 = vld [vmem:[%s944_s5 + $0x30] sm:$0xff]   ;;  %v691_v43 = vld [vmem:[%s944_s5 + $0x28] sm:$0xff]  }
  0x28   :  { %337 = vmatpush2.bf16.msra.mxu1 %v667_v25  ;;  %609 = vmatpush3.bf16.msra.mxu0 %v687_v39  ;;  %v692_v44 = vld [vmem:[%s944_s5 + $0x60] sm:$0xff]   ;;  %v694_v46 = vld [vmem:[%s944_s5 + $0x58] sm:$0xff]   ;;  %v696_v48 = vld [vmem:[%s944_s5 + $0x50] sm:$0xff]   ;;  %v37_v52 = vsub.s32 0, %v36_v51  ;;  %v41_v54 = vsub.s32 1, %v36_v51 }
  0x29   :  { %338 = vmatprep.subr.bf16.mxu1 %v668_v26  ;;  %610 = vmatprep.subr.bf16.mxu0 %v688_v40  ;;  %v693_v45 = vld [vmem:[%s944_s5 + $0x20] sm:$0xff]   ;;  %v695_v47 = vld [vmem:[%s944_s5 + $0x18] sm:$0xff]   ;;  %v697_v49 = vld [vmem:[%s944_s5 + $0x10] sm:$0xff]  }
  0x2a   :  { %v33_v53 = vld [vmem:[%s941_s2] sm:$0x3]  ;;  %v698_v3 = vld [vmem:[%s944_s5 + $0x48] sm:$0xff]  }
  0x2b   :  { %v38_v55 = vrot.slane %v33_v53, %v37_v52  ;;  %v42_v56 = vrot.slane %v33_v53, %v41_v54  ;;  %v699_v4 = vld [vmem:[%s944_s5 + $0x8] sm:$0xff]   ;;  %v700_v5 = vld [vmem:[%s944_s5 + $0x40] sm:$0xff]  }
  0x2c   :  { %339 = vmatpush2.bf16.msra.mxu1 %v670_v27  ;;  %611 = vmatpush3.bf16.msra.mxu0 %v689_v41  ;;  %v701_v6 = vld [vmem:[%s944_s5] sm:$0xff]  }
  0x2d   :  { %340 = vmatprep.subr.bf16.mxu1 %v671_v28  ;;  %612 = vmatprep.subr.bf16.mxu0 %v690_v42  ;;  %v146_v7 = vld [vmem:[%s943_s4] sm:$0x3]  ;;  %s727_s4 = smov [#allocation2]  }
  0x2e   :  { %v151_v8 = vrot.slane %v146_v7, %v37_v52  ;;  %v155_v9 = vrot.slane %v146_v7, %v41_v54  ;;  %v591_v21 = vld [vmem:[%s945_s6] ss:$0 sm:$0xff]  ;;  %s546_s9 = sshll.u32 %s727_s4, 4  ;;  %s547_s9 = int_to_ptr.vmem [resolvable:$true] %s546_s9 }
  0x2f   :  { %s704_s10 = scalar_lea.vmem %s547_s9, 128  ;;  %p709_p1 = scmp.lt.s32.totalorder %s547_s9, %s547_s9 }
  0x30   :  { %341 = vmatpush2.bf16.msra.mxu1 %v673_v29  ;;  %613 = vmatpush3.bf16.msra.mxu0 %v691_v43  ;;  %p705_p0 = scmp.ne.s32.totalorder %s547_s9, %s704_s10  ;;  %p710_p2 = scmp.lt.s32.totalorder %s704_s10, %s704_s10 }
  0x31   :  { %342 = vmatprep.subr.bf16.mxu1 %v674_v30  ;;  %614 = vmatprep.subr.bf16.mxu0 %v692_v44 }
  0x32   :  { %p711_p3 = por %p710_p2, %p709_p1 }
  0x34   :  { %343 = vmatpush2.bf16.msra.mxu1 %v676_v31  ;;  %615 = vmatpush3.bf16.msra.mxu0 %v693_v45  ;;  %p712_p4 = pnand %p711_p3, %p705_p0 }
  0x35   :  { %344 = vmatprep.subr.bf16.mxu1 %v677_v32  ;;  %616 = vmatprep.subr.bf16.mxu0 %v694_v46 }
  0x38   :  { %345 = vmatpush2.bf16.msra.mxu1 %v679_v33  ;;  %617 = vmatpush3.bf16.msra.mxu0 %v695_v47 }
  0x39   :  { %346 = vmatprep.subr.bf16.mxu1 %v680_v34  ;;  %618 = vmatprep.subr.bf16.mxu0 %v696_v48 }
  0x3c   :  { %347 = vmatpush2.bf16.msra.mxu1 %v682_v35  ;;  %619 = vmatpush3.bf16.msra.mxu0 %v697_v49 }
  0x3d   :  { %348 = vmatprep.subr.bf16.mxu1 %v683_v36  ;;  %620 = vmatprep.subr.bf16.mxu0 %v698_v3 }
  0x40   :  { %349 = vmatpush2.bf16.msra.mxu1 %v685_v37  ;;  %621 = vmatpush3.bf16.msra.mxu0 %v699_v4 }
  0x41   :  { %622 = vmatprep.subr.bf16.mxu0 %v700_v5 }
  0x44   :  { %623 = vmatpush3.bf16.msra.mxu0 %v701_v6 }
  0xca   :  { %v103_v57 = vpop.f32.mrf.mxu0 }
  0xcb   :  { %v104_v58 = vadd.f32 %v103_v57, %v38_v55 }
  0xcc   :  { %v105_v59 = vpop.f32.mrf.mxu0 }
  0xcd   :  { %v106_v60 = vadd.f32 %v105_v59, %v42_v56  ;;  %v110_v61 = vmax.f32 %v104_v58, 0.0 }
  0xce   :  { %v107_v62 = vpop.f32.mrf.mxu0 }
  0xcf   :  { %v111_v63 = vmax.f32 %v106_v60, 0.0  ;;  %v112_v2 = vpack.c.bf16 %v110_v61, %v110_v61 }
  0xd0   :  { %v108_v0 = vpop.f32.mrf.mxu0 }
  0xd1   :  { %v113_v1 = vpack.c.bf16 %v111_v63, %v111_v63 }
  0xd3   :  { %350 = vmatprep.mubr.bf16.mxu1 %v113_v1 }
  0xd4   :  { %351 = vmatmul.mubr.bf16.vlgmr.msra.gmra.mxu1 %v112_v2 }
 0x194   :  { %v352_v10 = vpop.f32.mrf.mxu1 }
 0x195   :  { %v353_v11 = vadd.f32 %v352_v10, %v151_v8 }
 0x196   :  { %v354_v12 = vpop.f32.mrf.mxu1 }
 0x197   :  { %v355_v13 = vadd.f32 %v354_v12, %v155_v9  ;;  %v359_v14 = vmax.f32 %v353_v11, 0.0 }
 0x198   :  { %v356_v15 = vpop.f32.mrf.mxu1 }
 0x199   :  { %v360_v16 = vmax.f32 %v355_v13, 0.0  ;;  %v361_v19 = vpack.c.bf16 %v359_v14, %v359_v14 }
 0x19a   :  { %v357_v17 = vpop.f32.mrf.mxu1 }
 0x19b   :  { %v362_v18 = vpack.c.bf16 %v360_v16, %v360_v16 }
 0x19d   :  { %530 = vmatprep.mubr.bf16.mxu0 %v362_v18 }
 0x19e   :  { %531 = vmatmul.mubr.bf16.vlgmr.msra.gmra.mxu0 %v361_v19 }
 0x25e   :  { %v624_v20 = vpop.f32.mrf.mxu0 }
 0x260   :  { %v625_v22 = vpop.f32.mrf.mxu0 }
 0x261   :  { %v626_v23 = vadd.f32 %v625_v22, %v624_v20 }
 0x262   :  { %v627_v24 = vpop.f32.mrf.mxu0 }
 0x263   :  { %v533_v25 = vadd.f32 %v626_v23, %v591_v21 }
 0x264   :  { %v628_v26 = vpop.f32.mrf.mxu0 }
 0x265   :  { %702 = vtanh.f32 %v533_v25 }
 0x272   :  { %v703_v27 = vpop.eup %702 }
 0x273   :  { %539 = vst [vmem:[#allocation2] sm:$0xff] %v703_v27 }
 0x274   :  { %715 = shalt.err (!%p712_p4)
}
 0x275   :  { %549 = dma.vmem_to_hbm [thread:$0]  %s547_s9, 128, %s946_s7, [#allocation3]  }
 0x276   :  { %724 = dma.done.wait [#allocation3], 128  }
 0x277   :  { %725 = vsyncadd [#allocation3], 4294967168 }
 0x278   :  { %553 = vsyncpa [#allocation3], 1 }

</bundles_post_ra>
